<compile_context>
chip_gen: v6e
topology: v6e:2x2x1
jax: 0.10.0
libtpu: 0.0.40
codegen_flags: <defaults>
</compile_context>

<pallas_src>
import math
import functools

import numpy as np
import jax
import jax.numpy as jnp
from jax import lax
from jax.experimental import pallas as pl
from jax.experimental.pallas import tpu as pltpu


# ----------------------------------------------------------------------------
# Pallas kernels
# ----------------------------------------------------------------------------

def _layer_norm_f32(x, g, b):
    # x: (T, C) f32; g/b: (1, C). PyTorch LayerNorm, eps=1e-5.
    mean = jnp.mean(x, axis=-1, keepdims=True)
    xc = x - mean
    var = jnp.mean(xc * xc, axis=-1, keepdims=True)
    return xc * lax.rsqrt(var + 1e-5) * g + b


def _stack_kernel(x_ref, ln1_g_ref, ln1_b_ref, wqkv_ref, wo_ref,
                  ln2_g_ref, ln2_b_ref, w1_ref, b1_ref, w2_ref, b2_ref,
                  o_ref, *, nb_heads, dim_qk, dim_v, causal):
    """One transformer layer per (batch, layer) grid step.

    The residual stream lives in the output block, whose index map is constant over the
    layer axis, so it stays resident in VMEM across layers: one HBM read and one HBM
    write of the (T, C) activation per sequence for the whole stack."""
    l = pl.program_id(1)

    @pl.when(l == 0)
    def _():
        o_ref[...] = x_ref[...]          # load the residual stream once per sequence

    x = o_ref[0].astype(jnp.float32)     # (T, C) resident residual stream
    T = x.shape[0]
    cdt = wqkv_ref.dtype                 # MXU input dtype (f32 or bf16), f32 accumulate

    # ---------------- attention sub-block: x + Wo . softmax(Q K^T + bias) . V ------
    xl = _layer_norm_f32(x, ln1_g_ref[0].astype(jnp.float32),
                         ln1_b_ref[0].astype(jnp.float32))
    qkv = jnp.dot(xl.astype(cdt), wqkv_ref[0],
                  preferred_element_type=jnp.float32)        # (T, H*(2*dqk+dv))

    hq = nb_heads * dim_qk
    if causal:
        row = lax.broadcasted_iota(jnp.int32, (T, T), 0)
        col = lax.broadcasted_iota(jnp.int32, (T, T), 1)
        # finite additive mask: no inf-inf NaN hazard in the max-subtract path
        bias = jnp.where(row < col, jnp.float32(-1e30), jnp.float32(0.0))

    wo = wo_ref[0]                                           # (H*dv, C)
    dn = (((1,), (1,)), ((), ()))                            # contract last dims (q @ k^T)
    att = jnp.zeros_like(x)                                  # f32 (T, C)
    # TODO(synk): flash (KV-tiled online-softmax) loop + lane-padded head slabs for
    #             production shapes; the per-head accumulation below already serializes
    #             head score matrices so only ~one (T,T) slab is live at a time.
    for h in range(nb_heads):
        q = qkv[:, h * dim_qk:(h + 1) * dim_qk]                      # (T, dqk), scale folded into Wq
        k = qkv[:, hq + h * dim_qk: hq + (h + 1) * dim_qk]           # (T, dqk)
        v = qkv[:, 2 * hq + h * dim_v: 2 * hq + (h + 1) * dim_v]     # (T, dv)
        s = lax.dot_general(q.astype(cdt), k.astype(cdt), dn,
                            preferred_element_type=jnp.float32)      # (T, T)
        if causal:
            s = s + bias
        s = s - jnp.max(s, axis=-1, keepdims=True)
        p = jnp.exp(s)
        p = p / jnp.sum(p, axis=-1, keepdims=True)           # exact; off the MXU critical path
        o_h = jnp.dot(p.astype(cdt), v.astype(cdt),
                      preferred_element_type=jnp.float32)    # (T, dv)
        # accumulate straight into the residual width: row-sliced Wo is sublane-aligned,
        # so there is no lane-misaligned head concat.
        att = att + jnp.dot(o_h.astype(cdt), wo[h * dim_v:(h + 1) * dim_v, :],
                            preferred_element_type=jnp.float32)
    x = x + att

    # ---------------- MLP sub-block: x + W2 . relu(W1 . LN(x) + b1) + b2 -----------
    xl2 = _layer_norm_f32(x, ln2_g_ref[0].astype(jnp.float32),
                          ln2_b_ref[0].astype(jnp.float32))
    h1 = jnp.dot(xl2.astype(cdt), w1_ref[0],
                 preferred_element_type=jnp.float32) + b1_ref[0].astype(jnp.float32)
    h1 = jnp.maximum(h1, 0.0)
    x = x + jnp.dot(h1.astype(cdt), w2_ref[0],
                    preferred_element_type=jnp.float32) + b2_ref[0].astype(jnp.float32)

    o_ref[0] = x.astype(o_ref.dtype)


def _readout_kernel(x_ref, w_ref, b_ref, o_ref, *, inv_temperature):
    # x_ref: (1, tq, C)  w: (C, tv)  b: (1, tv)  o: (1, tq, <=tv) — lane-dense MXU matmul,
    # the store is clipped to the valid vocab columns inside the kernel (no post slice).
    cdt = w_ref.dtype
    x = x_ref[0]
    out = jnp.dot(x.astype(cdt), w_ref[...], preferred_element_type=jnp.float32)
    out = (out + b_ref[...].astype(jnp.float32)) * inv_temperature
    vout = o_ref.shape[-1]
    o_ref[0] = out[:, :vout].astype(o_ref.dtype)


# ----------------------------------------------------------------------------
# Wrappers
# ----------------------------------------------------------------------------

def _round_up(v, m):
    return ((v + m - 1) // m) * m


def _pick_tile(n, candidates=(512, 256, 128)):
    for t in candidates:
        if n % t == 0:
            return t
    return n


def _vmem_limit(block_bytes, margin=8 << 20):
    # double-buffered blocks + in-kernel intermediates + slack, clamped to
    # [default scoped limit, ~physical]
    ws = 2 * int(sum(block_bytes)) + margin
    return int(min(100 << 20, max(32 << 20, ws)))


def transformer_stack(x, stacked, *, nb_heads, dim_qk, dim_v, causal,
                      layer_start=0, layer_count=None):
    N, T, C = x.shape
    L = stacked["w_qkv"].shape[0]
    if layer_count is None:
        layer_count = L
    Dqkv = stacked["w_qkv"].shape[2]
    HD = stacked["w_o"].shape[1]
    Dh = stacked["w1"].shape[2]

    ab = x.dtype.itemsize
    wb = stacked["w_qkv"].dtype.itemsize
    vmem = _vmem_limit([
        2 * T * C * ab,                                    # x in + residual-out blocks
        (C * Dqkv + HD * C + C * Dh + Dh * C) * wb,        # one layer's matmul weights
        (4 * C + Dh) * 4,                                  # LN params + biases (f32)
        (T * Dqkv + T * T + T * Dh + 2 * T * C) * 4,       # in-kernel f32 intermediates
    ])

    kernel = functools.partial(_stack_kernel, nb_heads=nb_heads, dim_qk=dim_qk,
                               dim_v=dim_v, causal=causal)
    lo = layer_start
    return pl.pallas_call(
        kernel,
        out_shape=jax.ShapeDtypeStruct((N, T, C), x.dtype),
        grid=(N, layer_count),
        in_specs=[
            pl.BlockSpec((1, T, C), lambda n, l: (n, 0, 0)),           # x (read once per n)
            pl.BlockSpec((1, 1, C), lambda n, l: (lo + l, 0, 0)),      # ln1 gamma
            pl.BlockSpec((1, 1, C), lambda n, l: (lo + l, 0, 0)),      # ln1 beta
            pl.BlockSpec((1, C, Dqkv), lambda n, l: (lo + l, 0, 0)),   # stacked QKV weights
            pl.BlockSpec((1, HD, C), lambda n, l: (lo + l, 0, 0)),     # output projection
            pl.BlockSpec((1, 1, C), lambda n, l: (lo + l, 0, 0)),      # ln2 gamma
            pl.BlockSpec((1, 1, C), lambda n, l: (lo + l, 0, 0)),      # ln2 beta
            pl.BlockSpec((1, C, Dh), lambda n, l: (lo + l, 0, 0)),     # mlp w1
            pl.BlockSpec((1, 1, Dh), lambda n, l: (lo + l, 0, 0)),     # mlp b1
            pl.BlockSpec((1, Dh, C), lambda n, l: (lo + l, 0, 0)),     # mlp w2
            pl.BlockSpec((1, 1, C), lambda n, l: (lo + l, 0, 0)),      # mlp b2
        ],
        # constant over l => residual stream resident in VMEM across the layer axis
        out_specs=pl.BlockSpec((1, T, C), lambda n, l: (n, 0, 0)),
        compiler_params=pltpu.CompilerParams(
            dimension_semantics=("parallel", "arbitrary"),
            vmem_limit_bytes=vmem),
    )(x, stacked["ln1_g"], stacked["ln1_b"], stacked["w_qkv"], stacked["w_o"],
      stacked["ln2_g"], stacked["ln2_b"], stacked["w1"], stacked["b1"],
      stacked["w2"], stacked["b2"])


def readout(x, w_ro_pad, b_ro_pad, vocab, temperature):
    N, T, C = x.shape
    Vp = w_ro_pad.shape[1]
    tv = _pick_tile(Vp)
    n_v = Vp // tv
    tq = T if T <= 256 else 256
    n_t = pl.cdiv(T, tq)

    ab = x.dtype.itemsize
    wb = w_ro_pad.dtype.itemsize
    vmem = _vmem_limit([tq * C * ab, C * tv * wb, tv * 4, 2 * tq * tv * 4])

    kernel = functools.partial(_readout_kernel, inv_temperature=1.0 / temperature)
    if n_v == 1:
        # single vocab tile: write directly into the (possibly non-128) full vocab dim
        out_block, out_map = (1, tq, vocab), (lambda n, t, v: (n, t, 0))
    else:
        # lane-dense 128-multiple vocab tiles; any ragged last tile is clipped by Pallas
        out_block, out_map = (1, tq, tv), (lambda n, t, v: (n, t, v))

    return pl.pallas_call(
        kernel,
        out_shape=jax.ShapeDtypeStruct((N, T, vocab), jnp.float32),
        grid=(N, n_t, n_v),
        in_specs=[pl.BlockSpec((1, tq, C), lambda n, t, v: (n, t, 0)),
                  pl.BlockSpec((C, tv), lambda n, t, v: (0, v)),
                  pl.BlockSpec((1, tv), lambda n, t, v: (0, v))],
        out_specs=pl.BlockSpec(out_block, out_map),
        compiler_params=pltpu.CompilerParams(
            dimension_semantics=("parallel", "parallel", "arbitrary"),
            vmem_limit_bytes=vmem),
    )(x, w_ro_pad, b_ro_pad)


# ----------------------------------------------------------------------------
# Parameters: PyTorch-layout init + one-time repack for the fused kernels
# ----------------------------------------------------------------------------

def init_params(key, *, vocabulary_size, dim_model, dim_keys, dim_hidden,
                nb_heads, nb_blocks, causal, len_max):
    dv = dim_model // nb_heads
    keys = jax.random.split(key, 2 + 8 * nb_blocks)
    ki = iter(keys)
    params = {
        "causal": causal,
        "len_max": float(len_max),
        "temperature": 1.0,
        # nn.Embedding weight ~ N(0, 0.02)
        "w_emb": 0.02 * jax.random.normal(next(ki), (vocabulary_size, dim_model),
                                          jnp.float32),
        "blocks": [],
    }
    for _ in range(nb_blocks):
        blk = {
            "ln1_g": jnp.ones((dim_model,), jnp.float32),
            "ln1_b": jnp.zeros((dim_model,), jnp.float32),
            # QKVAttention randw(*d) = randn(*d)/sqrt(d[-1])
            "w_q": jax.random.normal(next(ki), (nb_heads, dim_keys, dim_model),
                                     jnp.float32) / math.sqrt(dim_model),
            "w_k": jax.random.normal(next(ki), (nb_heads, dim_keys, dim_model),
                                     jnp.float32) / math.sqrt(dim_model),
            "w_v": jax.random.normal(next(ki), (nb_heads, dv, dim_model),
                                     jnp.float32) / math.sqrt(dim_model),
            "w_o": jax.random.normal(next(ki), (dv * nb_heads, dim_model),
                                     jnp.float32) / math.sqrt(dim_model),
            "ln2_g": jnp.ones((dim_model,), jnp.float32),
            "ln2_b": jnp.zeros((dim_model,), jnp.float32),
            # MLP Linears, stored pre-transposed (in, out)
            "w1": jax.random.normal(next(ki), (dim_model, dim_hidden),
                                    jnp.float32) / math.sqrt(dim_model),
            "b1": jnp.zeros((dim_hidden,), jnp.float32),
            "w2": jax.random.normal(next(ki), (dim_hidden, dim_model),
                                    jnp.float32) / math.sqrt(dim_hidden),
            "b2": jnp.zeros((dim_model,), jnp.float32),
        }
        params["blocks"].append(blk)
    params["w_ro"] = jax.random.normal(next(ki), (dim_model, vocabulary_size),
                                       jnp.float32) / math.sqrt(dim_model)
    params["b_ro"] = jnp.zeros((vocabulary_size,), jnp.float32)
    return params


def prepare_params(params, param_dtype=jnp.float32):
    """One-time repack:
      * per-head Q/K/V weights stacked into one (C, H*(2*dqk+dv)) matrix per layer,
        with the 1/sqrt(dqk) softmax scale folded into Wq,
      * per-layer weights stacked along a leading L axis (layers become a grid axis),
      * matmul weights / activations cast to `param_dtype` (bf16 on v6e/v7x); LN params
        and biases stay f32,
      * readout weight padded to a 128-lane multiple of the vocab."""
    C = params["w_emb"].shape[1]
    H, dqk, _ = params["blocks"][0]["w_q"].shape
    dv = params["blocks"][0]["w_v"].shape[1]
    scale = 1.0 / math.sqrt(dqk)

    def stack(fn):
        return jnp.stack([fn(blk) for blk in params["blocks"]], axis=0)

    def qkv_mat(blk):
        wq = jnp.transpose(blk["w_q"], (2, 0, 1)).reshape(C, H * dqk) * scale
        wk = jnp.transpose(blk["w_k"], (2, 0, 1)).reshape(C, H * dqk)
        wv = jnp.transpose(blk["w_v"], (2, 0, 1)).reshape(C, H * dv)
        return jnp.concatenate([wq, wk, wv], axis=1)

    blocks = {
        "ln1_g": stack(lambda b: b["ln1_g"].reshape(1, C)),
        "ln1_b": stack(lambda b: b["ln1_b"].reshape(1, C)),
        "w_qkv": stack(qkv_mat).astype(param_dtype),
        "w_o": stack(lambda b: b["w_o"]).astype(param_dtype),
        "ln2_g": stack(lambda b: b["ln2_g"].reshape(1, C)),
        "ln2_b": stack(lambda b: b["ln2_b"].reshape(1, C)),
        "w1": stack(lambda b: b["w1"]).astype(param_dtype),
        "b1": stack(lambda b: b["b1"].reshape(1, -1)),
        "w2": stack(lambda b: b["w2"]).astype(param_dtype),
        "b2": stack(lambda b: b["b2"].reshape(1, C)),
    }
    V = params["w_ro"].shape[1]
    Vp = _round_up(V, 128)
    return {
        "causal": params["causal"],
        "len_max": params["len_max"],
        "temperature": params["temperature"],
        "w_emb": params["w_emb"].astype(param_dtype),
        "blocks": blocks,
        "w_ro": jnp.pad(params["w_ro"], ((0, 0), (0, Vp - V))).astype(param_dtype),
        "b_ro": jnp.pad(params["b_ro"], (0, Vp - V)).reshape(1, Vp),
        "vocab": V,
        "nb_heads": H, "dim_qk": dqk, "dim_v": dv,
    }


def positional_encoding(T, C, len_max):
    # Host-side (numpy) so the jit path, the eager path and the reference all use the
    # exact same constant bits (the previous device/const-fold mismatch is gone).
    t = np.arange(T, dtype=np.float64)[:, None]
    j = np.arange(C, dtype=np.float64)[None, :]
    k = j % 2
    pe = np.sin(t / np.power(len_max, (j - k) / C) + (math.pi / 2) * k)
    return jnp.asarray(pe, dtype=jnp.float32)


def mygpt_forward(fast, tokens, cache=None):
    """tokens: (N, T) int32 -> logits (N, T, vocab) f32.
    If `cache` is a dict (eager debug mode), per-module activations are stored in it,
    mirroring ActivationCacheWrapper's host-side cache[name] = x.clone(); that mode runs
    one pallas_call per layer so intermediates are observable."""
    N, T = tokens.shape
    # F.pad(x, (1, -1)): shift right by one along the sequence, pad with token 0.
    shifted = jnp.pad(tokens, ((0, 0), (1, 0)))[:, :T]
    # Embedding gather + PE add stay in XLA — one fused mem-bound pass, no extra
    # pallas_call round-trip of the (N, T, C) activation.
    x = jnp.take(fast["w_emb"], shifted, axis=0)             # (N, T, C)
    C = x.shape[-1]
    pe = positional_encoding(T, C, fast["len_max"])
    x = x + pe[None].astype(x.dtype)
    if cache is not None:
        cache["embedding"] = x

    L = fast["blocks"]["w_qkv"].shape[0]
    kw = dict(nb_heads=fast["nb_heads"], dim_qk=fast["dim_qk"],
              dim_v=fast["dim_v"], causal=fast["causal"])
    if cache is None:
        # fused path: layers on the grid; residual stream stays in VMEM across layers.
        x = transformer_stack(x, fast["blocks"], layer_start=0, layer_count=L, **kw)
    else:
        for i in range(L):
            x = transformer_stack(x, fast["blocks"], layer_start=i, layer_count=1, **kw)
            cache[f"block_{i}"] = x

    logits = readout(x, fast["w_ro"], fast["b_ro"], fast["vocab"], fast["temperature"])
    if cache is not None:
        cache["readout"] = logits
    return logits


# ----------------------------------------------------------------------------
# Pure-JAX reference (mirrors the PyTorch math) for a correctness check
# ----------------------------------------------------------------------------

def mygpt_reference(params, tokens):
    N, T = tokens.shape
    shifted = jnp.pad(tokens, ((0, 0), (1, 0)))[:, :T]
    x = jnp.take(params["w_emb"], shifted, axis=0)
    C = x.shape[-1]
    x = x + positional_encoding(T, C, params["len_max"])[None]

    def ln(v, g, b):
        m = jnp.mean(v, -1, keepdims=True)
        var = jnp.mean((v - m) ** 2, -1, keepdims=True)
        return (v - m) / jnp.sqrt(var + 1e-5) * g + b

    for blk in params["blocks"]:
        xl = ln(x, blk["ln1_g"], blk["ln1_b"])
        q = jnp.einsum("ntc,hdc->nhtd", xl, blk["w_q"])
        k = jnp.einsum("ntc,hdc->nhtd", xl, blk["w_k"])
        v = jnp.einsum("ntc,hdc->nhtd", xl, blk["w_v"])
        a = jnp.einsum("nhtd,nhsd->nhts", q, k) / math.sqrt(blk["w_q"].shape[1])
        if params["causal"]:
            mask = jnp.arange(T)[:, None] < jnp.arange(T)[None, :]
            a = jnp.where(mask[None, None], -jnp.inf, a)
        a = jax.nn.softmax(a, axis=3)
        y = jnp.einsum("nhts,nhsd->nthd", a, v).reshape(N, T, -1)
        x = x + y @ blk["w_o"]
        xl = ln(x, blk["ln2_g"], blk["ln2_b"])
        h = jnp.maximum(xl @ blk["w1"] + blk["b1"], 0.0)
        x = x + h @ blk["w2"] + blk["b2"]
    return (x @ params["w_ro"] + params["b_ro"]) / params["temperature"]


# ----------------------------------------------------------------------------

if __name__ == "__main__":
    # small shapes consistent with MyGPT's forward
    vocabulary_size = 11
    dim_model = 32
    dim_keys = 8
    dim_hidden = 64
    nb_heads = 2
    nb_blocks = 2
    N, T = 2, 8

    root = jax.random.PRNGKey(0)
    k_params, k_tok = jax.random.split(root)
    params = init_params(k_params,
                         vocabulary_size=vocabulary_size, dim_model=dim_model,
                         dim_keys=dim_keys, dim_hidden=dim_hidden,
                         nb_heads=nb_heads, nb_blocks=nb_blocks,
                         causal=True, len_max=1e5)
    tokens = jax.random.randint(k_tok, (N, T), 0, vocabulary_size, jnp.int32)

    # f32 path (matches the f32 PyTorch reference numerics)
    fast = prepare_params(params, param_dtype=jnp.float32)
    forward = jax.jit(functools.partial(mygpt_forward, fast))
    logits = jax.block_until_ready(forward(tokens))
    assert logits.shape == (N, T, vocabulary_size)

    # Eager pass exercising the ActivationCacheWrapper-style host cache
    # (per-layer kernel path so block activations are observable).
    cache = {}
    logits_cached = jax.block_until_ready(mygpt_forward(fast, tokens, cache=cache))
    assert set(cache) == {"embedding", "readout"} | {f"block_{i}" for i in range(nb_blocks)}
    assert jnp.allclose(logits, logits_cached, rtol=1e-4, atol=1e-4), \
        "jit (fused layer-grid) vs eager (per-layer) mismatch"

    # Correctness vs. the pure-JAX reference (run at highest matmul precision).
    with jax.default_matmul_precision("highest"):
        ref = jax.block_until_ready(mygpt_reference(params, tokens))
    assert jnp.allclose(logits, ref, rtol=2e-2, atol=2e-2), "mismatch vs reference"

    # bf16-weights / f32-accumulate path (v6e/v7x production dtype) — smoke test.
    fast_bf16 = prepare_params(params, param_dtype=jnp.bfloat16)
    logits_bf16 = jax.block_until_ready(
        jax.jit(functools.partial(mygpt_forward, fast_bf16))(tokens))
    assert logits_bf16.shape == (N, T, vocabulary_size)
    assert bool(jnp.all(jnp.isfinite(logits_bf16)))

    print("KERNEL_OK")
</pallas_src>

<mosaic_0001>
module attributes {stable_mosaic.version = 11 : i64} {
  func.func @_readout_kernel(%arg0: i32, %arg1: i32, %arg2: i32, %arg3: memref<1x8x32xf32, #tpu.memory_space<vmem>>, %arg4: memref<32x128xf32, #tpu.memory_space<vmem>>, %arg5: memref<1x128xf32, #tpu.memory_space<vmem>>, %arg6: memref<1x8x11xf32, #tpu.memory_space<vmem>>) attributes {dimension_semantics = [#tpu.dimension_semantics<parallel>, #tpu.dimension_semantics<parallel>, #tpu.dimension_semantics<arbitrary>], iteration_bounds = array<i64: 2, 1, 1>, scalar_prefetch = 0 : i64, scratch_operands = 0 : i64, tpu.core_type = #tpu.core_type<tc>, window_params = [{transform_indices = @transform_0, window_bounds = array<i64: 1, 8, 32>}, {transform_indices = @transform_1, window_bounds = array<i64: 32, 128>}, {transform_indices = @transform_2, window_bounds = array<i64: 1, 128>}, {transform_indices = @transform_3, window_bounds = array<i64: 1, 8, 11>}]} {
    %c0 = arith.constant 0 : index
    %c0_0 = arith.constant 0 : index
    %c0_1 = arith.constant 0 : index
    %0 = vector.load %arg3[%c0, %c0_0, %c0_1] : memref<1x8x32xf32, #tpu.memory_space<vmem>>, vector<1x8x32xf32>
    %1 = vector.shape_cast %0 : vector<1x8x32xf32> to vector<8x32xf32>
    %c0_2 = arith.constant 0 : index
    %c0_3 = arith.constant 0 : index
    %2 = vector.load %arg4[%c0_2, %c0_3] : memref<32x128xf32, #tpu.memory_space<vmem>>, vector<32x128xf32>
    %cst = arith.constant dense<0.000000e+00> : vector<8x128xf32>
    %3 = tpu.matmul %1, %2, %cst {dimension_numbers = #tpu.dot_dimension_numbers<[1], [0], [0], [1], [0, 0, 1, 1], [], []>} : vector<8x32xf32>, vector<32x128xf32>, vector<8x128xf32> -> vector<8x128xf32>
    %c0_4 = arith.constant 0 : index
    %c0_5 = arith.constant 0 : index
    %4 = vector.load %arg5[%c0_4, %c0_5] : memref<1x128xf32, #tpu.memory_space<vmem>>, vector<1x128xf32>
    %5 = vector.broadcast %4 : vector<1x128xf32> to vector<8x128xf32>
    %6 = arith.addf %3, %5 : vector<8x128xf32>
    %cst_6 = arith.constant 1.000000e+00 : f32
    %7 = vector.broadcast %cst_6 : f32 to vector<8x128xf32>
    %8 = arith.mulf %6, %7 : vector<8x128xf32>
    %9 = vector.extract_strided_slice %8 {offsets = [0, 0], sizes = [8, 11], strides = [1, 1]} : vector<8x128xf32> to vector<8x11xf32>
    %c0_7 = arith.constant 0 : index
    %c0_8 = arith.constant 0 : index
    %c0_9 = arith.constant 0 : index
    %10 = vector.load %arg6[%c0_7, %c0_8, %c0_9] : memref<1x8x11xf32, #tpu.memory_space<vmem>>, vector<1x8x11xf32>
    %11 = vector.shape_cast %10 : vector<1x8x11xf32> to vector<8x11xf32>
    %12 = vector.shape_cast %9 : vector<8x11xf32> to vector<1x8x11xf32>
    tpu.vector_store %arg6[%c0_7, %c0_8, %c0_9], %12 {strides = array<i32>} : memref<1x8x11xf32, #tpu.memory_space<vmem>>, vector<1x8x11xf32>,
    return
  }
  func.func @transform_0(%arg0: i32, %arg1: i32, %arg2: i32) -> (i32, i32, i32) {
    %c0_i32 = arith.constant 0 : i32
    %c0_i32_0 = arith.constant 0 : i32
    return %arg0, %arg1, %c0_i32 : i32, i32, i32
  }
  func.func @transform_1(%arg0: i32, %arg1: i32, %arg2: i32) -> (i32, i32) {
    %c0_i32 = arith.constant 0 : i32
    %c0_i32_0 = arith.constant 0 : i32
    return %c0_i32, %arg2 : i32, i32
  }
  func.func @transform_2(%arg0: i32, %arg1: i32, %arg2: i32) -> (i32, i32) {
    %c0_i32 = arith.constant 0 : i32
    %c0_i32_0 = arith.constant 0 : i32
    return %c0_i32, %arg2 : i32, i32
  }
  func.func @transform_3(%arg0: i32, %arg1: i32, %arg2: i32) -> (i32, i32, i32) {
    %c0_i32 = arith.constant 0 : i32
    %c0_i32_0 = arith.constant 0 : i32
    return %arg0, %arg1, %c0_i32 : i32, i32, i32
  }
}

module attributes {stable_mosaic.version = 11 : i64} {
  func.func @_stack_kernel(%arg0: i32, %arg1: i32, %arg2: memref<1x8x32xf32, #tpu.memory_space<vmem>>, %arg3: memref<1x1x32xf32, #tpu.memory_space<vmem>>, %arg4: memref<1x1x32xf32, #tpu.memory_space<vmem>>, %arg5: memref<1x32x64xf32, #tpu.memory_space<vmem>>, %arg6: memref<1x32x32xf32, #tpu.memory_space<vmem>>, %arg7: memref<1x1x32xf32, #tpu.memory_space<vmem>>, %arg8: memref<1x1x32xf32, #tpu.memory_space<vmem>>, %arg9: memref<1x32x64xf32, #tpu.memory_space<vmem>>, %arg10: memref<1x1x64xf32, #tpu.memory_space<vmem>>, %arg11: memref<1x64x32xf32, #tpu.memory_space<vmem>>, %arg12: memref<1x1x32xf32, #tpu.memory_space<vmem>>, %arg13: memref<1x8x32xf32, #tpu.memory_space<vmem>>) attributes {dimension_semantics = [#tpu.dimension_semantics<parallel>, #tpu.dimension_semantics<arbitrary>], iteration_bounds = array<i64: 2, 2>, scalar_prefetch = 0 : i64, scratch_operands = 0 : i64, tpu.core_type = #tpu.core_type<tc>, window_params = [{transform_indices = @transform_0, window_bounds = array<i64: 1, 8, 32>}, {transform_indices = @transform_1, window_bounds = array<i64: 1, 1, 32>}, {transform_indices = @transform_2, window_bounds = array<i64: 1, 1, 32>}, {transform_indices = @transform_3, window_bounds = array<i64: 1, 32, 64>}, {transform_indices = @transform_4, window_bounds = array<i64: 1, 32, 32>}, {transform_indices = @transform_5, window_bounds = array<i64: 1, 1, 32>}, {transform_indices = @transform_6, window_bounds = array<i64: 1, 1, 32>}, {transform_indices = @transform_7, window_bounds = array<i64: 1, 32, 64>}, {transform_indices = @transform_8, window_bounds = array<i64: 1, 1, 64>}, {transform_indices = @transform_9, window_bounds = array<i64: 1, 64, 32>}, {transform_indices = @transform_10, window_bounds = array<i64: 1, 1, 32>}, {transform_indices = @transform_11, window_bounds = array<i64: 1, 8, 32>}]} {
    %c0_i32 = arith.constant 0 : i32
    %0 = arith.cmpi eq, %arg1, %c0_i32 : i32
    %1 = arith.extui %0 : i1 to i32
    %c0_i32_0 = arith.constant 0 : i32
    %2 = arith.cmpi ne, %1, %c0_i32_0 : i32
    scf.if %2 {
      %c0_62 = arith.constant 0 : index
      %c0_63 = arith.constant 0 : index
      %c0_64 = arith.constant 0 : index
      %122 = vector.load %arg2[%c0_62, %c0_63, %c0_64] : memref<1x8x32xf32, #tpu.memory_space<vmem>>, vector<1x8x32xf32>
      %c0_65 = arith.constant 0 : index
      %c0_66 = arith.constant 0 : index
      %c0_67 = arith.constant 0 : index
      %123 = vector.load %arg13[%c0_65, %c0_66, %c0_67] : memref<1x8x32xf32, #tpu.memory_space<vmem>>, vector<1x8x32xf32>
      tpu.vector_store %arg13[%c0_65, %c0_66, %c0_67], %122 {strides = array<i32>} : memref<1x8x32xf32, #tpu.memory_space<vmem>>, vector<1x8x32xf32>,
    } else {
    }
    %c0 = arith.constant 0 : index
    %c0_1 = arith.constant 0 : index
    %c0_2 = arith.constant 0 : index
    %3 = vector.load %arg13[%c0, %c0_1, %c0_2] : memref<1x8x32xf32, #tpu.memory_space<vmem>>, vector<1x8x32xf32>
    %4 = vector.shape_cast %3 : vector<1x8x32xf32> to vector<8x32xf32>
    %c0_3 = arith.constant 0 : index
    %c0_4 = arith.constant 0 : index
    %c0_5 = arith.constant 0 : index
    %5 = vector.load %arg3[%c0_3, %c0_4, %c0_5] : memref<1x1x32xf32, #tpu.memory_space<vmem>>, vector<1x1x32xf32>
    %6 = vector.shape_cast %5 : vector<1x1x32xf32> to vector<1x32xf32>
    %c0_6 = arith.constant 0 : index
    %c0_7 = arith.constant 0 : index
    %c0_8 = arith.constant 0 : index
    %7 = vector.load %arg4[%c0_6, %c0_7, %c0_8] : memref<1x1x32xf32, #tpu.memory_space<vmem>>, vector<1x1x32xf32>
    %8 = vector.shape_cast %7 : vector<1x1x32xf32> to vector<1x32xf32>
    %cst = arith.constant dense<0.000000e+00> : vector<8xf32>
    %9 = vector.multi_reduction <add>, %4, %cst [1] : vector<8x32xf32> to vector<8xf32>
    %10 = vector.shape_cast %9 : vector<8xf32> to vector<8x1xf32>
    %cst_9 = arith.constant 3.200000e+01 : f32
    %11 = vector.broadcast %cst_9 : f32 to vector<8x1xf32>
    %12 = arith.divf %10, %11 : vector<8x1xf32>
    %13 = vector.broadcast %12 : vector<8x1xf32> to vector<8x32xf32>
    %14 = arith.subf %4, %13 : vector<8x32xf32>
    %15 = arith.mulf %14, %14 : vector<8x32xf32>
    %cst_10 = arith.constant dense<0.000000e+00> : vector<8xf32>
    %16 = vector.multi_reduction <add>, %15, %cst_10 [1] : vector<8x32xf32> to vector<8xf32>
    %17 = vector.shape_cast %16 : vector<8xf32> to vector<8x1xf32>
    %cst_11 = arith.constant 3.200000e+01 : f32
    %18 = vector.broadcast %cst_11 : f32 to vector<8x1xf32>
    %19 = arith.divf %17, %18 : vector<8x1xf32>
    %cst_12 = arith.constant 9.99999974E-6 : f32
    %20 = vector.broadcast %cst_12 : f32 to vector<8x1xf32>
    %21 = arith.addf %19, %20 : vector<8x1xf32>
    %22 = math.rsqrt %21 : vector<8x1xf32>
    %23 = vector.broadcast %22 : vector<8x1xf32> to vector<8x32xf32>
    %24 = arith.mulf %14, %23 : vector<8x32xf32>
    %25 = vector.broadcast %6 : vector<1x32xf32> to vector<8x32xf32>
    %26 = arith.mulf %24, %25 : vector<8x32xf32>
    %27 = vector.broadcast %8 : vector<1x32xf32> to vector<8x32xf32>
    %28 = arith.addf %26, %27 : vector<8x32xf32>
    %c0_13 = arith.constant 0 : index
    %c0_14 = arith.constant 0 : index
    %c0_15 = arith.constant 0 : index
    %29 = vector.load %arg5[%c0_13, %c0_14, %c0_15] : memref<1x32x64xf32, #tpu.memory_space<vmem>>, vector<1x32x64xf32>
    %30 = vector.shape_cast %29 : vector<1x32x64xf32> to vector<32x64xf32>
    %cst_16 = arith.constant dense<0.000000e+00> : vector<8x64xf32>
    %31 = tpu.matmul %28, %30, %cst_16 {dimension_numbers = #tpu.dot_dimension_numbers<[1], [0], [0], [1], [0, 0, 1, 1], [], []>} : vector<8x32xf32>, vector<32x64xf32>, vector<8x64xf32> -> vector<8x64xf32>
    %32 = tpu.iota {dimensions = array<i32: 0>} : vector<8x8xi32>
    %33 = tpu.iota {dimensions = array<i32: 1>} : vector<8x8xi32>
    %34 = arith.cmpi slt, %32, %33 : vector<8x8xi32>
    %cst_17 = arith.constant -1.000000e+30 : f32
    %cst_18 = arith.constant 0.000000e+00 : f32
    %35 = vector.broadcast %cst_17 : f32 to vector<8x8xf32>
    %36 = vector.broadcast %cst_18 : f32 to vector<8x8xf32>
    %37 = arith.select %34, %35, %36 : vector<8x8xi1>, vector<8x8xf32>
    %c0_19 = arith.constant 0 : index
    %c0_20 = arith.constant 0 : index
    %c0_21 = arith.constant 0 : index
    %38 = vector.load %arg6[%c0_19, %c0_20, %c0_21] : memref<1x32x32xf32, #tpu.memory_space<vmem>>, vector<1x32x32xf32>
    %39 = vector.shape_cast %38 : vector<1x32x32xf32> to vector<32x32xf32>
    %cst_22 = arith.constant 0.000000e+00 : f32
    %40 = vector.broadcast %cst_22 : f32 to vector<8x32xf32>
    %41 = vector.extract_strided_slice %31 {offsets = [0, 0], sizes = [8, 8], strides = [1, 1]} : vector<8x64xf32> to vector<8x8xf32>
    %42 = vector.extract_strided_slice %31 {offsets = [0, 16], sizes = [8, 8], strides = [1, 1]} : vector<8x64xf32> to vector<8x8xf32>
    %43 = vector.extract_strided_slice %31 {offsets = [0, 32], sizes = [8, 16], strides = [1, 1]} : vector<8x64xf32> to vector<8x16xf32>
    %cst_23 = arith.constant dense<0.000000e+00> : vector<8x8xf32>
    %44 = tpu.matmul %41, %42, %cst_23 {dimension_numbers = #tpu.dot_dimension_numbers<[1], [1], [0], [0], [0, 0, 1, 0], [], []>} : vector<8x8xf32>, vector<8x8xf32>, vector<8x8xf32> -> vector<8x8xf32>
    %45 = arith.addf %44, %37 : vector<8x8xf32>
    %cst_24 = arith.constant dense<0xFF800000> : vector<8xf32>
    %46 = vector.multi_reduction <maximumf>, %45, %cst_24 [1] : vector<8x8xf32> to vector<8xf32>
    %47 = vector.shape_cast %46 : vector<8xf32> to vector<8x1xf32>
    %48 = vector.broadcast %47 : vector<8x1xf32> to vector<8x8xf32>
    %49 = arith.subf %45, %48 : vector<8x8xf32>
    %50 = math.exp %49 : vector<8x8xf32>
    %cst_25 = arith.constant dense<0.000000e+00> : vector<8xf32>
    %51 = vector.multi_reduction <add>, %50, %cst_25 [1] : vector<8x8xf32> to vector<8xf32>
    %52 = vector.shape_cast %51 : vector<8xf32> to vector<8x1xf32>
    %53 = vector.broadcast %52 : vector<8x1xf32> to vector<8x8xf32>
    %54 = arith.divf %50, %53 : vector<8x8xf32>
    %cst_26 = arith.constant dense<0.000000e+00> : vector<8x16xf32>
    %55 = tpu.matmul %54, %43, %cst_26 {dimension_numbers = #tpu.dot_dimension_numbers<[1], [0], [0], [1], [0, 0, 1, 1], [], []>} : vector<8x8xf32>, vector<8x16xf32>, vector<8x16xf32> -> vector<8x16xf32>
    %56 = vector.extract_strided_slice %39 {offsets = [0, 0], sizes = [16, 32], strides = [1, 1]} : vector<32x32xf32> to vector<16x32xf32>
    %cst_27 = arith.constant dense<0.000000e+00> : vector<8x32xf32>
    %57 = tpu.matmul %55, %56, %cst_27 {dimension_numbers = #tpu.dot_dimension_numbers<[1], [0], [0], [1], [0, 0, 1, 1], [], []>} : vector<8x16xf32>, vector<16x32xf32>, vector<8x32xf32> -> vector<8x32xf32>
    %58 = arith.addf %40, %57 : vector<8x32xf32>
    %59 = vector.extract_strided_slice %31 {offsets = [0, 8], sizes = [8, 8], strides = [1, 1]} : vector<8x64xf32> to vector<8x8xf32>
    %60 = vector.extract_strided_slice %31 {offsets = [0, 24], sizes = [8, 8], strides = [1, 1]} : vector<8x64xf32> to vector<8x8xf32>
    %61 = vector.extract_strided_slice %31 {offsets = [0, 48], sizes = [8, 16], strides = [1, 1]} : vector<8x64xf32> to vector<8x16xf32>
    %cst_28 = arith.constant dense<0.000000e+00> : vector<8x8xf32>
    %62 = tpu.matmul %59, %60, %cst_28 {dimension_numbers = #tpu.dot_dimension_numbers<[1], [1], [0], [0], [0, 0, 1, 0], [], []>} : vector<8x8xf32>, vector<8x8xf32>, vector<8x8xf32> -> vector<8x8xf32>
    %63 = arith.addf %62, %37 : vector<8x8xf32>
    %cst_29 = arith.constant dense<0xFF800000> : vector<8xf32>
    %64 = vector.multi_reduction <maximumf>, %63, %cst_29 [1] : vector<8x8xf32> to vector<8xf32>
    %65 = vector.shape_cast %64 : vector<8xf32> to vector<8x1xf32>
    %66 = vector.broadcast %65 : vector<8x1xf32> to vector<8x8xf32>
    %67 = arith.subf %63, %66 : vector<8x8xf32>
    %68 = math.exp %67 : vector<8x8xf32>
    %cst_30 = arith.constant dense<0.000000e+00> : vector<8xf32>
    %69 = vector.multi_reduction <add>, %68, %cst_30 [1] : vector<8x8xf32> to vector<8xf32>
    %70 = vector.shape_cast %69 : vector<8xf32> to vector<8x1xf32>
    %71 = vector.broadcast %70 : vector<8x1xf32> to vector<8x8xf32>
    %72 = arith.divf %68, %71 : vector<8x8xf32>
    %cst_31 = arith.constant dense<0.000000e+00> : vector<8x16xf32>
    %73 = tpu.matmul %72, %61, %cst_31 {dimension_numbers = #tpu.dot_dimension_numbers<[1], [0], [0], [1], [0, 0, 1, 1], [], []>} : vector<8x8xf32>, vector<8x16xf32>, vector<8x16xf32> -> vector<8x16xf32>
    %74 = vector.extract_strided_slice %39 {offsets = [16, 0], sizes = [16, 32], strides = [1, 1]} : vector<32x32xf32> to vector<16x32xf32>
    %cst_32 = arith.constant dense<0.000000e+00> : vector<8x32xf32>
    %75 = tpu.matmul %73, %74, %cst_32 {dimension_numbers = #tpu.dot_dimension_numbers<[1], [0], [0], [1], [0, 0, 1, 1], [], []>} : vector<8x16xf32>, vector<16x32xf32>, vector<8x32xf32> -> vector<8x32xf32>
    %76 = arith.addf %58, %75 : vector<8x32xf32>
    %77 = arith.addf %4, %76 : vector<8x32xf32>
    %c0_33 = arith.constant 0 : index
    %c0_34 = arith.constant 0 : index
    %c0_35 = arith.constant 0 : index
    %78 = vector.load %arg7[%c0_33, %c0_34, %c0_35] : memref<1x1x32xf32, #tpu.memory_space<vmem>>, vector<1x1x32xf32>
    %79 = vector.shape_cast %78 : vector<1x1x32xf32> to vector<1x32xf32>
    %c0_36 = arith.constant 0 : index
    %c0_37 = arith.constant 0 : index
    %c0_38 = arith.constant 0 : index
    %80 = vector.load %arg8[%c0_36, %c0_37, %c0_38] : memref<1x1x32xf32, #tpu.memory_space<vmem>>, vector<1x1x32xf32>
    %81 = vector.shape_cast %80 : vector<1x1x32xf32> to vector<1x32xf32>
    %cst_39 = arith.constant dense<0.000000e+00> : vector<8xf32>
    %82 = vector.multi_reduction <add>, %77, %cst_39 [1] : vector<8x32xf32> to vector<8xf32>
    %83 = vector.shape_cast %82 : vector<8xf32> to vector<8x1xf32>
    %cst_40 = arith.constant 3.200000e+01 : f32
    %84 = vector.broadcast %cst_40 : f32 to vector<8x1xf32>
    %85 = arith.divf %83, %84 : vector<8x1xf32>
    %86 = vector.broadcast %85 : vector<8x1xf32> to vector<8x32xf32>
    %87 = arith.subf %77, %86 : vector<8x32xf32>
    %88 = arith.mulf %87, %87 : vector<8x32xf32>
    %cst_41 = arith.constant dense<0.000000e+00> : vector<8xf32>
    %89 = vector.multi_reduction <add>, %88, %cst_41 [1] : vector<8x32xf32> to vector<8xf32>
    %90 = vector.shape_cast %89 : vector<8xf32> to vector<8x1xf32>
    %cst_42 = arith.constant 3.200000e+01 : f32
    %91 = vector.broadcast %cst_42 : f32 to vector<8x1xf32>
    %92 = arith.divf %90, %91 : vector<8x1xf32>
    %cst_43 = arith.constant 9.99999974E-6 : f32
    %93 = vector.broadcast %cst_43 : f32 to vector<8x1xf32>
    %94 = arith.addf %92, %93 : vector<8x1xf32>
    %95 = math.rsqrt %94 : vector<8x1xf32>
    %96 = vector.broadcast %95 : vector<8x1xf32> to vector<8x32xf32>
    %97 = arith.mulf %87, %96 : vector<8x32xf32>
    %98 = vector.broadcast %79 : vector<1x32xf32> to vector<8x32xf32>
    %99 = arith.mulf %97, %98 : vector<8x32xf32>
    %100 = vector.broadcast %81 : vector<1x32xf32> to vector<8x32xf32>
    %101 = arith.addf %99, %100 : vector<8x32xf32>
    %c0_44 = arith.constant 0 : index
    %c0_45 = arith.constant 0 : index
    %c0_46 = arith.constant 0 : index
    %102 = vector.load %arg9[%c0_44, %c0_45, %c0_46] : memref<1x32x64xf32, #tpu.memory_space<vmem>>, vector<1x32x64xf32>
    %103 = vector.shape_cast %102 : vector<1x32x64xf32> to vector<32x64xf32>
    %cst_47 = arith.constant dense<0.000000e+00> : vector<8x64xf32>
    %104 = tpu.matmul %101, %103, %cst_47 {dimension_numbers = #tpu.dot_dimension_numbers<[1], [0], [0], [1], [0, 0, 1, 1], [], []>} : vector<8x32xf32>, vector<32x64xf32>, vector<8x64xf32> -> vector<8x64xf32>
    %c0_48 = arith.constant 0 : index
    %c0_49 = arith.constant 0 : index
    %c0_50 = arith.constant 0 : index
    %105 = vector.load %arg10[%c0_48, %c0_49, %c0_50] : memref<1x1x64xf32, #tpu.memory_space<vmem>>, vector<1x1x64xf32>
    %106 = vector.shape_cast %105 : vector<1x1x64xf32> to vector<1x64xf32>
    %107 = vector.broadcast %106 : vector<1x64xf32> to vector<8x64xf32>
    %108 = arith.addf %104, %107 : vector<8x64xf32>
    %cst_51 = arith.constant 0.000000e+00 : f32
    %109 = vector.broadcast %cst_51 : f32 to vector<8x64xf32>
    %110 = arith.maximumf %108, %109 : vector<8x64xf32>
    %c0_52 = arith.constant 0 : index
    %c0_53 = arith.constant 0 : index
    %c0_54 = arith.constant 0 : index
    %111 = vector.load %arg11[%c0_52, %c0_53, %c0_54] : memref<1x64x32xf32, #tpu.memory_space<vmem>>, vector<1x64x32xf32>
    %112 = vector.shape_cast %111 : vector<1x64x32xf32> to vector<64x32xf32>
    %cst_55 = arith.constant dense<0.000000e+00> : vector<8x32xf32>
    %113 = tpu.matmul %110, %112, %cst_55 {dimension_numbers = #tpu.dot_dimension_numbers<[1], [0], [0], [1], [0, 0, 1, 1], [], []>} : vector<8x64xf32>, vector<64x32xf32>, vector<8x32xf32> -> vector<8x32xf32>
    %114 = arith.addf %77, %113 : vector<8x32xf32>
    %c0_56 = arith.constant 0 : index
    %c0_57 = arith.constant 0 : index
    %c0_58 = arith.constant 0 : index
    %115 = vector.load %arg12[%c0_56, %c0_57, %c0_58] : memref<1x1x32xf32, #tpu.memory_space<vmem>>, vector<1x1x32xf32>
    %116 = vector.shape_cast %115 : vector<1x1x32xf32> to vector<1x32xf32>
    %117 = vector.broadcast %116 : vector<1x32xf32> to vector<8x32xf32>
    %118 = arith.addf %114, %117 : vector<8x32xf32>
    %c0_59 = arith.constant 0 : index
    %c0_60 = arith.constant 0 : index
    %c0_61 = arith.constant 0 : index
    %119 = vector.load %arg13[%c0_59, %c0_60, %c0_61] : memref<1x8x32xf32, #tpu.memory_space<vmem>>, vector<1x8x32xf32>
    %120 = vector.shape_cast %119 : vector<1x8x32xf32> to vector<8x32xf32>
    %121 = vector.shape_cast %118 : vector<8x32xf32> to vector<1x8x32xf32>
    tpu.vector_store %arg13[%c0_59, %c0_60, %c0_61], %121 {strides = array<i32>} : memref<1x8x32xf32, #tpu.memory_space<vmem>>, vector<1x8x32xf32>,
    return
  }
  func.func @transform_0(%arg0: i32, %arg1: i32) -> (i32, i32, i32) {
    %c0_i32 = arith.constant 0 : i32
    %c0_i32_0 = arith.constant 0 : i32
    %c0_i32_1 = arith.constant 0 : i32
    return %arg0, %c0_i32, %c0_i32_0 : i32, i32, i32
  }
  func.func @transform_1(%arg0: i32, %arg1: i32) -> (i32, i32, i32) {
    %c0_i32 = arith.constant 0 : i32
    %0 = arith.addi %c0_i32, %arg1 : i32
    %c0_i32_0 = arith.constant 0 : i32
    %c0_i32_1 = arith.constant 0 : i32
    %c0_i32_2 = arith.constant 0 : i32
    return %0, %c0_i32_0, %c0_i32_1 : i32, i32, i32
  }
  func.func @transform_2(%arg0: i32, %arg1: i32) -> (i32, i32, i32) {
    %c0_i32 = arith.constant 0 : i32
    %0 = arith.addi %c0_i32, %arg1 : i32
    %c0_i32_0 = arith.constant 0 : i32
    %c0_i32_1 = arith.constant 0 : i32
    %c0_i32_2 = arith.constant 0 : i32
    return %0, %c0_i32_0, %c0_i32_1 : i32, i32, i32
  }
  func.func @transform_3(%arg0: i32, %arg1: i32) -> (i32, i32, i32) {
    %c0_i32 = arith.constant 0 : i32
    %0 = arith.addi %c0_i32, %arg1 : i32
    %c0_i32_0 = arith.constant 0 : i32
    %c0_i32_1 = arith.constant 0 : i32
    %c0_i32_2 = arith.constant 0 : i32
    return %0, %c0_i32_0, %c0_i32_1 : i32, i32, i32
  }
  func.func @transform_4(%arg0: i32, %arg1: i32) -> (i32, i32, i32) {
    %c0_i32 = arith.constant 0 : i32
    %0 = arith.addi %c0_i32, %arg1 : i32
    %c0_i32_0 = arith.constant 0 : i32
    %c0_i32_1 = arith.constant 0 : i32
    %c0_i32_2 = arith.constant 0 : i32
    return %0, %c0_i32_0, %c0_i32_1 : i32, i32, i32
  }
  func.func @transform_5(%arg0: i32, %arg1: i32) -> (i32, i32, i32) {
    %c0_i32 = arith.constant 0 : i32
    %0 = arith.addi %c0_i32, %arg1 : i32
    %c0_i32_0 = arith.constant 0 : i32
    %c0_i32_1 = arith.constant 0 : i32
    %c0_i32_2 = arith.constant 0 : i32
    return %0, %c0_i32_0, %c0_i32_1 : i32, i32, i32
  }
  func.func @transform_6(%arg0: i32, %arg1: i32) -> (i32, i32, i32) {
    %c0_i32 = arith.constant 0 : i32
    %0 = arith.addi %c0_i32, %arg1 : i32
    %c0_i32_0 = arith.constant 0 : i32
    %c0_i32_1 = arith.constant 0 : i32
    %c0_i32_2 = arith.constant 0 : i32
    return %0, %c0_i32_0, %c0_i32_1 : i32, i32, i32
  }
  func.func @transform_7(%arg0: i32, %arg1: i32) -> (i32, i32, i32) {
    %c0_i32 = arith.constant 0 : i32
    %0 = arith.addi %c0_i32, %arg1 : i32
    %c0_i32_0 = arith.constant 0 : i32
    %c0_i32_1 = arith.constant 0 : i32
    %c0_i32_2 = arith.constant 0 : i32
    return %0, %c0_i32_0, %c0_i32_1 : i32, i32, i32
  }
  func.func @transform_8(%arg0: i32, %arg1: i32) -> (i32, i32, i32) {
    %c0_i32 = arith.constant 0 : i32
    %0 = arith.addi %c0_i32, %arg1 : i32
    %c0_i32_0 = arith.constant 0 : i32
    %c0_i32_1 = arith.constant 0 : i32
    %c0_i32_2 = arith.constant 0 : i32
    return %0, %c0_i32_0, %c0_i32_1 : i32, i32, i32
  }
  func.func @transform_9(%arg0: i32, %arg1: i32) -> (i32, i32, i32) {
    %c0_i32 = arith.constant 0 : i32
    %0 = arith.addi %c0_i32, %arg1 : i32
    %c0_i32_0 = arith.constant 0 : i32
    %c0_i32_1 = arith.constant 0 : i32
    %c0_i32_2 = arith.constant 0 : i32
    return %0, %c0_i32_0, %c0_i32_1 : i32, i32, i32
  }
  func.func @transform_10(%arg0: i32, %arg1: i32) -> (i32, i32, i32) {
    %c0_i32 = arith.constant 0 : i32
    %0 = arith.addi %c0_i32, %arg1 : i32
    %c0_i32_0 = arith.constant 0 : i32
    %c0_i32_1 = arith.constant 0 : i32
    %c0_i32_2 = arith.constant 0 : i32
    return %0, %c0_i32_0, %c0_i32_1 : i32, i32, i32
  }
  func.func @transform_11(%arg0: i32, %arg1: i32) -> (i32, i32, i32) {
    %c0_i32 = arith.constant 0 : i32
    %c0_i32_0 = arith.constant 0 : i32
    %c0_i32_1 = arith.constant 0 : i32
    return %arg0, %c0_i32, %c0_i32_0 : i32, i32, i32
  }
}

</mosaic_0001>

<bundles_post_ra>
// kernel: mygpt_forward.3
= control target key start
LH: loop header
LB: loop body
LE: loop exit
PB: predicated region body
PF: predicated region fallthrough
CT: control target
= control target key end

     0   :  { %8 = vsyncpa [#allocation3], 0  ;;  %s742_s0 = inlined_call_operand.vmem [shape: f32[2,8,32], index: 0, kind: input, shape index: {}]   ;;  %s743_s1 = inlined_call_operand.vmem [shape: f32[32,128], index: 1, kind: input, shape index: {}]   ;;  %s744_s2 = inlined_call_operand.vmem [shape: f32[1,128], index: 2, kind: input, shape index: {}]   ;;  %s745_s3 = inlined_call_operand.hbm [shape: f32[2,8,11], index: 3, kind: output, shape index: {}]  }
   0x1   :  { %10 = vsyncpa [#allocation3 + $0x1], 0  ;;  %s622_s12 = smov 0   ;;  %s624_s13 = smov 0  }
   0x2   :  { %s626_s14 = smov 0   ;;  %s628_s15 = smov 0  }
   0x3   :  { %s630_s16 = smov 0   ;;  %s632_s17 = smov 0  }
   0x4 LB: > { %s433_s18 = sadd.s32 4294967295, %s597_s17   ;;  %s434_s19 = sadd.s32 4294967294, %s597_s17   ;;  %s597_s17 = sphi %s632_s17, %s16_s17   ;;  %s593_s16 = sphi %s630_s16, %s752_s16   ;;  %s589_s15 = sphi %s628_s15, %s751_s15   ;;  %s585_s14 = sphi %s626_s14, %s750_s14   ;;  %s581_s13 = sphi %s624_s13, %s749_s13   ;;  %s577_s12 = sphi %s622_s12, %s748_s12  }
   0x5   : > { %s35_s20 = sadd.s32 1, %s593_s16  ;;  %s124_s21 = sadd.s32 1, %s585_s14 }
   0x6   : > { %p37_p0 = scmp.ge.s32.totalorder %s35_s20, 2  ;;  %p134_p1 = scmp.ne.s32.totalorder %s585_s14, %s581_s13 }
   0x7   : > { %p135_p2 = scmp.eq.s32.totalorder %s433_s18, 1  ;;  %p140_p3 = scmp.ne.s32.totalorder %s581_s13, %s577_s12 }
   0x8   : > { %s754_s20 = smov (%p37_p0, %s35_s20), 0  ;;  %p141_p5 = scmp.eq.s32.totalorder %s434_s19, 1 }
   0x9   : > { %p662_p4 = por %p135_p2, %p134_p1  ;;  %s119_s23 = ssub.s32 %s593_s16, %s754_s20 }
   0xa   : > { %p439_p6 = scmp.ge.s32.totalorder %s597_s17, 1  ;;  %p122_p7 = scmp.eq.s32.totalorder %s119_s23, 0 }
   0xb   : > { %p669_p8 = por %p141_p5, %p140_p3  ;;  %p182_p9 = scmp.lt.s32.totalorder %s597_s17, 3 }
   0xc   : > { %s675_s25 = scalar_select %p122_p7, %s585_s14, %s124_s21  }
   0xd   : > { %p183_p10 = pnand %p439_p6, %p182_p9 }
   0xe   : > { %p215_p11 = scmp.lt.s32.totalorder (!%p183_p10), %s589_s15, 1  ;;  %s212_s18 = sand.u32 (!%p183_p10), 1, %s581_s13  }
   0xf   : > { %186 = sbr.rel (%p183_p10) target bundleno = 237 (0xed), region = 32  ;;  %s440_s19 = sshll.u32 (!%p183_p10), %s212_s18, 3 }
  0x10   : > { %s445_s26 = sshll.u32 (!%p183_p10), %s589_s15, 7  ;;  %s214_s27 = scalar_lea.vmem (!%p183_p10), [#allocation2], %s440_s19 }
  0x11   : > { %s332_s28 = sshll.u32 (!%p183_p10), %s214_s27, 4  ;;  %s702_s4 = scalar_lea.hbm (!%p183_p10), %s745_s3, %s445_s26  ;;  %s333_s28 = int_to_ptr.vmem [resolvable:$true] %s332_s28 }
  0x12   : > { %s318_s5 = scalar_lea.sflag (!%p183_p10), [#allocation3], %s212_s18 }
  0x14   : > { %v233_v0 = vld [vmem:[%s743_s1 + $0x18] sm:$0xff]  ;;  %v599_v1 = vmov 0.0   ;;  %v232_v2 = vld [vmem:[%s743_s1 + $0x10] sm:$0xff]  ;;  %vm600_vm0 = vmmov 0   ;;  %s216_s30 = scalar_select %p215_p11, %s589_s15, 1  ;;  %v231_v3 = vld [vmem:[%s743_s1 + $0x8] sm:$0xff] }
  0x15   : > { %453 = vmatprep.subr.mxu0 %v599_v1  ;;  %461 = vmatprep.mubr.msk.f32.mxu0 %vm600_vm0, %v599_v1  ;;  %v230_v4 = vld [vmem:[%s743_s1] sm:$0xff]  ;;  %vm241_vm1 = vcmask 261120   ;;  %vm315_vm2 = vcmask 89088   ;;  %s601_s15 = smov [#allocation2]  }
  0x16   : > { %454 = vmatpush3.msra.mxu0 %v233_v0  ;;  %s441_s6 = sshll.u32 %s216_s30, 3  ;;  %v442_v6 = vld [vmem:[%s744_s2] ss:$0 sm:$0xff]  ;;  %s525_s7 = sshll.u32 %s601_s15, 4  ;;  %s526_s7 = int_to_ptr.vmem [resolvable:$false] %s525_s7 }
  0x17   : > { %455 = vmatprep.subr.mxu0 %v599_v1  ;;  %s221_s11 = scalar_lea.vmem %s742_s0, %s441_s6  ;;  %s521_s6 = scalar_lea.vmem %s333_s28, 128 }
  0x18   : > { %456 = vmatpush3.msra.mxu0 %v232_v2  ;;  %v229_v5 = vld [vmem:[%s221_s11] sm:$0xff]  ;;  %p522_p12 = scmp.ne.s32.totalorder %s333_s28, %s521_s6  ;;  %s527_s8 = scalar_lea.vmem %s526_s7, 256 }
  0x19   : > { %457 = vmatprep.subr.mxu0 %v599_v1  ;;  %p528_p1 = scmp.lt.s32.totalorder %s333_s28, %s526_s7  ;;  %p529_p2 = scmp.lt.s32.totalorder %s527_s8, %s521_s6 }
  0x1a   : > { %458 = vmatpush3.msra.mxu0 %v231_v3  ;;  %p523_p13 = pnand %p522_p12, %p662_p4 }
  0x1b   : > { %459 = vmatprep.subr.mxu0 %v599_v1  ;;  %p530_p3 = por %p529_p2, %p528_p1 }
  0x1c   : > { %460 = vmatpush3.msra.mxu0 %v230_v4  ;;  %p524_p0 = pneg %p523_p13 }
  0x1d   : > { %462 = vmatmul.mubr.msk.f32.vlgmr.msra.gmra.mxu0 %vm241_vm1, %v229_v5 }
  0x1e   : > { %p531_p5 = pnand %p530_p3, %p524_p0 }
  0xdd   : > { %v311_v7 = vpop.f32.mrf.mxu0 }
  0xde   : > { %v312_v8 = vadd.f32 %v442_v6, %v311_v7 }
  0xdf   : > { %v463_v9 = vpop.f32.mrf.mxu0 }
  0xe0   : > { %316 = vst.msk [vmem:[%s214_s27] sm:$0xff] %vm315_vm2, %v312_v8 }
  0xe1   : > { %534 = shalt.err (!%p531_p5)
}
  0xe2   : > { %s535_s9 = scalar_lea.hbm %s702_s4, 128  ;;  %s539_s18 = scalar_lea.hbm %s745_s3, 256 }
  0xe3   : > { %p536_p6 = scmp.ne.s32.totalorder %s702_s4, %s535_s9  ;;  %p540_p10 = scmp.lt.s32.totalorder %s702_s4, %s745_s3 }
  0xe4   : > { %p541_p11 = scmp.lt.s32.totalorder %s539_s18, %s535_s9 }
  0xe5   : > { %p537_p7 = pnand %p536_p6, %p662_p4 }
  0xe6   : > { %p542_p12 = por %p541_p11, %p540_p10 }
  0xe7   : > { %p538_p9 = pneg %p537_p7 }
  0xe9   : > { %p543_p13 = pnand %p542_p12, %p538_p9 }
  0xeb   : > { %546 = shalt.err (!%p543_p13)
}
  0xec   : > { %464 = dma.vmem_to_hbm [thread:$0]  (%p662_p4), %s333_s28, 128, %s702_s4, %s318_s5  }
  0xed PF: > { %p470_p0 = scmp.ge.s32.totalorder %s597_s17, 2  ;;  %s344_s23 = sand.u32 1, %s577_s12  }
  0xee   : > { %s345_s26 = scalar_lea.sflag [#allocation3], %s344_s23 }
  0xef   : > { %p467_p1 = pnand %p470_p0, %p669_p8 }
  0xf1   : > { %p468_p2 = pneg %p467_p1 }
  0xf3   : > { %572 = dma.done.wait (%p468_p2), %s345_s26, 128  }
  0xf4   : > { %574 = vsyncadd (%p468_p2), %s345_s26, 4294967168  ;;  %s16_s17 = sadd.s32 1, %s597_s17   ;;  %s748_s12 = smov %s581_s13 }
  0xf5   : > { %p13_p3 = scmp.ge.s32.totalorder %s16_s17, 4   ;;  %s749_s13 = smov %s585_s14 }
  0xf6   : > { %s750_s14 = smov %s675_s25  ;;  %s751_s15 = smov %s593_s16 }
  0xf7   : > { %s752_s16 = smov %s754_s20  ;;  %15 = sbr.rel (!%p13_p3) target bundleno = 4 (0x4), region = 73 }
  0xfc   :  { %350 = vsyncpa [#allocation3], 1 }
  0xfd   :  { %352 = vsyncpa [#allocation3 + $0x1], 1 }

// kernel: mygpt_forward.2
= control target key start
LH: loop header
LB: loop body
LE: loop exit
PB: predicated region body
PF: predicated region fallthrough
CT: control target
= control target key end

     0   :  { %s2363_s0 = inlined_call_operand.vmem [shape: f32[2,8,32], index: 0, kind: input, shape index: {}]   ;;  %s2364_s1 = inlined_call_operand.vmem [shape: f32[2,1,32], index: 1, kind: input, shape index: {}, may-alias: {1,5}]   ;;  %s2365_s2 = inlined_call_operand.vmem [shape: f32[2,1,32], index: 2, kind: input, shape index: {}, may-alias: {2,6,10}]   ;;  %s2366_s3 = inlined_call_operand.vmem [shape: f32[2,32,64], index: 3, kind: input, shape index: {}]   ;;  %s2367_s4 = inlined_call_operand.hbm [shape: f32[2,32,32], index: 4, kind: input, shape index: {}]   ;;  %s2368_s5 = inlined_call_operand.vmem [shape: f32[2,1,32], index: 5, kind: input, shape index: {}, may-alias: {1,5}]   ;;  %s2369_s6 = inlined_call_operand.vmem [shape: f32[2,1,32], index: 6, kind: input, shape index: {}, may-alias: {2,6,10}]   ;;  %s2370_s7 = inlined_call_operand.hbm [shape: f32[2,32,64], index: 7, kind: input, shape index: {}]   ;;  %s2371_s8 = inlined_call_operand.vmem [shape: f32[2,1,64], index: 8, kind: input, shape index: {}]   ;;  %s2372_s9 = inlined_call_operand.vmem [shape: f32[2,64,32], index: 9, kind: input, shape index: {}]   ;;  %s2373_s10 = inlined_call_operand.vmem [shape: f32[2,1,32], index: 10, kind: input, shape index: {}, may-alias: {2,6,10}]   ;;  %s2374_s11 = inlined_call_operand.vmem [shape: f32[2,8,32], index: 11, kind: output, shape index: {}]  }
   0x1   :  { %2382 = sst [smem:[#allocation16_spill]] %s2363_s0 }
   0x2   :  { %2383 = sst [smem:[#allocation17_spill]] %s2366_s3 }
   0x3   :  { %2384 = sst [smem:[#allocation18_spill]] %s2367_s4 }
   0x4   :  { %2385 = sst [smem:[#allocation19_spill]] %s2370_s7 }
   0x5   :  { %2386 = sst [smem:[#allocation20_spill]] %s2372_s9 }
   0x6   :  { %2387 = sst [smem:[#allocation21_spill]] %s2374_s11 }
   0x7   :  { %16 = vsyncpa [#allocation3], 0 }
   0x8   :  { %18 = vsyncpa [#allocation3 + $0x1], 0 }
   0x9   :  { %19 = vsyncpa [#allocation5], 0 }
   0xa   :  { %21 = vsyncpa [#allocation5 + $0x1], 0  ;;  %s2044_s17 = smov 0   ;;  %s2046_s18 = smov 0  }
   0xb   :  { %s2048_s19 = smov 0   ;;  %s2050_s20 = smov 0  }
   0xc   :  { %s2052_s21 = smov 0   ;;  %s2054_s22 = smov 0  }
   0xd   :  { %s2056_s23 = smov 0   ;;  %s2058_s24 = smov 0  }
   0xe LB: > { %2388 = sst [smem:[#allocation8_spill]] %s1947_s18  ;;  %s1597_s25 = sadd.s32 4294967295, %s1971_s24   ;;  %s1971_s24 = sphi %s2058_s24, %s27_s24   ;;  %s1967_s23 = sphi %s2056_s23, %s2417_s23   ;;  %s1963_s22 = sphi %s2054_s22, %s2416_s22   ;;  %s1959_s21 = sphi %s2052_s21, %s2415_s21   ;;  %s1955_s20 = sphi %s2050_s20, %s2414_s20   ;;  %s1951_s19 = sphi %s2048_s19, %s2413_s19   ;;  %s1947_s18 = sphi %s2046_s18, %s2412_s18   ;;  %s1943_s17 = sphi %s2044_s17, %s2411_s17  }
   0xf   : > { %2389 = sst [smem:[#allocation9_spill]] %s1951_s19  ;;  %s36_s26 = sadd.s32 1, %s1963_s22 }
  0x10   : > { %2390 = sst [smem:[#allocation10_spill]] %s1963_s22  ;;  %p37_p0 = scmp.ge.s32.totalorder %s36_s26, 2 }
  0x11   : > { %2391 = sst [smem:[#allocation11_spill]] %s1967_s23  ;;  %s39_s27 = sadd.s32 1, %s1967_s23 }
  0x12   : > { %2392 = sst [smem:[#allocation12_spill]] %s1971_s24  ;;  %s150_s28 = sadd.s32 1, %s1951_s19 }
  0x13   : > { %p157_p1 = scmp.ne.s32.totalorder %s1951_s19, %s1947_s18  ;;  %s2419_s26 = smov (%p37_p0, %s36_s26), 0 }
  0x14   : > { %2393 = sst [smem:[#allocation13_spill]] %s2419_s26  ;;  %s2421_s27 = smov (!%p37_p0, %s39_s27), %s1967_s23 }
  0x15   : > { %s147_s29 = ssub.s32 %s1963_s22, %s2419_s26  ;;  %p158_p2 = scmp.eq.s32.totalorder %s1971_s24, 0 }
  0x16   : > { %p41_p3 = scmp.ge.s32.totalorder %s2421_s27, 2  ;;  %p148_p4 = scmp.eq.s32.totalorder %s147_s29, 0 }
  0x17   : > { %p2094_p5 = por %p158_p2, %p157_p1  ;;  %p163_p6 = scmp.ne.s32.totalorder %s1947_s18, %s1943_s17 }
  0x18   : > { %s2423_s27 = smov (%p41_p3, %s2421_s27), 0  ;;  %p164_p7 = scmp.eq.s32.totalorder %s1597_s25, 0 }
  0x19   : > { %2395 = sst [smem:[#allocation14_spill]] %s2423_s27  ;;  %p1759_p8 = scmp.lt.s32.totalorder %s1971_s24, 4 }
  0x1a   : > { %s2102_s12 = scalar_select %p148_p4, %s1951_s19, %s150_s28  }
  0x1b   : > { %s2106_s13 = sand.u32 1, %s1951_s19   ;;  %p2108_p9 = por %p164_p7, %p163_p6 }
  0x1c   : > { %2396 = sst [smem:[#allocation15_spill]] %s2102_s12  ;;  %s2377_s15 = sshll.u32 %s2106_s13, 5 }
  0x1d   : > { %s1636_s16 = sshll.u32 %s1963_s22, 9  ;;  %s2398_s4 = sld [smem:[#allocation18_spill]] }
  0x1e   : > { %s400_s28 = scalar_lea.vmem [#allocation2], %s2377_s15  ;;  %p2121_p10 = pnand %p1759_p8, %p2094_p5 }
  0x1f   : > { %s407_s27 = sshll.u32 %s400_s28, 4  ;;  %s397_s23 = scalar_lea.sflag [#allocation3], %s2106_s13  ;;  %s408_s27 = int_to_ptr.vmem [resolvable:$true] %s407_s27 }
  0x20   : > { %p1847_p11 = pneg %p2121_p10  ;;  %s1858_s12 = scalar_lea.vmem %s408_s27, 512 }
  0x21   : > { %p1859_p12 = scmp.ne.s32.totalorder %s408_s27, %s1858_s12  ;;  %s1973_s26 = smov [#allocation2]  }
  0x22   : > { %s1863_s29 = sshll.u32 %s1973_s26, 4  ;;  %s1864_s29 = int_to_ptr.vmem [resolvable:$false] %s1863_s29 }
  0x23   : > { %s406_s17 = scalar_lea.hbm %s2398_s4, %s1636_s16  ;;  %p1861_p13 = pnand %p1859_p12, %p1847_p11 }
  0x24   : > { %s1865_s30 = scalar_lea.vmem %s1864_s29, 1024  ;;  %p1866_p1 = scmp.lt.s32.totalorder %s408_s27, %s1864_s29 }
  0x25   : > { %p1862_p0 = pneg %p1861_p13  ;;  %p1867_p2 = scmp.lt.s32.totalorder %s1865_s30, %s1858_s12 }
  0x27   : > { %p1868_p3 = por %p1867_p2, %p1866_p1 }
  0x29   : > { %p1869_p4 = pnand %p1868_p3, %p1862_p0 }
  0x2b   : > { %1872 = shalt.err (!%p1869_p4)
}
  0x2c   : > { %s1974_s28 = smov 128   ;;  %s1975_s15 = smov 8  }
  0x2d   : > { %1755 = dma.hbm_to_vmem [thread:$0]  (!%p2121_p10), %s406_s17, 512, %s408_s27, %s397_s23, %s1974_s28, %s1974_s28, %s1975_s15  }
  0x2e   : > { %p1607_p5 = scmp.ge.s32.totalorder %s1971_s24, 1  ;;  %p468_p6 = scmp.lt.s32.totalorder %s1971_s24, 5 }
  0x2f   : > { %s2401_s7 = sld [smem:[#allocation19_spill]]  ;;  %s2402_s4 = sshll.u32 %s2106_s13, 5 }
  0x30   : > { %p2135_p7 = pnand %p1607_p5, %p468_p6  ;;  %s433_s22 = scalar_lea.vmem [#allocation4], %s2402_s4 }
  0x31   : > { %s440_s19 = sshll.u32 %s433_s22, 4  ;;  %s430_s11 = scalar_lea.sflag [#allocation5], %s2106_s13  ;;  %s441_s19 = int_to_ptr.vmem [resolvable:$true] %s440_s19 }
  0x32   : > { %s1886_s9 = scalar_lea.vmem %s441_s19, 512  ;;  %s1976_s23 = smov [#allocation4]  }
  0x33   : > { %p1887_p8 = scmp.ne.s32.totalorder %s441_s19, %s1886_s9  ;;  %s1891_s27 = sshll.u32 %s1976_s23, 4  ;;  %s1892_s27 = int_to_ptr.vmem [resolvable:$false] %s1891_s27 }
  0x34   : > { %s1893_s17 = scalar_lea.vmem %s1892_s27, 1024  ;;  %p1894_p0 = scmp.lt.s32.totalorder %s441_s19, %s1892_s27 }
  0x35   : > { %s439_s30 = scalar_lea.hbm %s2401_s7, %s1636_s16  ;;  %p1889_p12 = pnand %p1887_p8, %p1847_p11 }
  0x36   : > { %p1895_p1 = scmp.lt.s32.totalorder %s1893_s17, %s1886_s9 }
  0x37   : > { %p1890_p13 = pneg %p1889_p12 }
  0x38   : > { %p1896_p2 = por %p1895_p1, %p1894_p0 }
  0x3a   : > { %p1897_p3 = pnand %p1896_p2, %p1890_p13 }
  0x3c   : > { %1900 = shalt.err (!%p1897_p3)
}
  0x3d   : > { %1758 = dma.hbm_to_vmem [thread:$0]  (!%p2121_p10), %s439_s30, 512, %s441_s19, %s430_s11, %s1974_s28, %s1974_s28, %s1975_s15  }
  0x3e   : > { %472 = sbr.rel (%p2135_p7) target bundleno = 2317 (0x90d), region = 64  ;;  %s474_s4 = sand.u32 (!%p2135_p7), 1, %s1947_s18  }
  0x3f   : > { %s1608_s22 = sshll.u32 (!%p2135_p7), %s474_s4, 5  ;;  %s475_s13 = scalar_lea.sflag (!%p2135_p7), [#allocation3], %s474_s4 }
  0x40   : > { %s2153_s16 = scalar_lea.vmem (!%p2135_p7), [#allocation2], %s1608_s22 }
  0x43   : > { %1934 = dma.done.wait (%p2108_p9), %s475_s13, 512  }
  0x44   : > { %1936 = vsyncadd (%p2108_p9), %s475_s13, 4294966784  ;;  %s484_s9 = scalar_lea.sflag [#allocation5], %s474_s4  ;;  %s2159_s12 = scalar_lea.vmem [#allocation4], %s1608_s22 }
  0x45   : > { %1938 = dma.done.wait (%p2108_p9), %s484_s9, 512  }
  0x46   : > { %1940 = vsyncadd (%p2108_p9), %s484_s9, 4294966784  ;;  %p562_p10 = scmp.lt.s32.totalorder %s1959_s21, 1  ;;  %p566_p11 = scmp.lt.s32.totalorder %s1955_s20, 1 }
  0x47   : > { %s2403_s0 = sld [smem:[#allocation16_spill]]  ;;  %p1616_p9 = scmp.ne.s32.totalorder %s1955_s20, 0 }
  0x48   : > { %s2425_s21 = smov (!%p562_p10, %s1959_s21), 1  ;;  %s2404_s3 = sld [smem:[#allocation17_spill]] }
  0x49   : > { %s2169_s11 = scalar_select %p566_p11, %s1955_s20, 1 }
  0x4a   : > { %s1610_s19 = sshll.u32 %s2425_s21, 3  ;;  %s2405_s22 = sld [smem:[#allocation20_spill]] }
  0x4b   : > { %s1638_s17 = sshll.u32 %s2169_s11, 5  ;;  %s585_s29 = scalar_lea.vmem %s2371_s8, %s2169_s11 }
  0x4c   : > { %s1639_s30 = sshll.u32 %s2169_s11, 6  ;;  %s593_s18 = scalar_lea.vmem %s2373_s10, %s2169_s11 }
  0x4d   : > { %s565_s25 = scalar_lea.vmem %s2403_s0, %s1610_s19  ;;  %s582_s0 = scalar_lea.vmem %s2369_s6, %s2169_s11 }
  0x4e   : > { %s2186_s13 = scalar_lea.vmem %s2404_s3, %s1638_s17  ;;  %s2406_s7 = sld [smem:[#allocation21_spill]] }
  0x50   : > { %s2208_s3 = scalar_lea.vmem %s2405_s22, %s1639_s30  ;;  %601 = sbr.rel (%p1616_p9) target bundleno = 87 (0x57), region = 76 }
  0x54   : > { %s2213_s24 = scalar_lea.vmem %s2406_s7, %s1610_s19 }
  0x55   : > { %v602_v0 = vld [vmem:[%s565_s25] sm:$0xff]  ;;  %vm603_vm0 = vcmask 261120  }
  0x56   : > { %604 = vst.msk [vmem:[%s2213_s24] sm:$0xff] %vm603_vm0, %v602_v0 }
  0x57 PF: > { %vm608_vm1 = vcmask 261120   ;;  %v640_v8 = vld [vmem:[%s2186_s13 + $0x18] sm:$0xff]  ;;  %v1977_v9 = vmov 0.0   ;;  %v639_v10 = vld [vmem:[%s2186_s13 + $0x10] sm:$0xff]  ;;  %vm1978_vm2 = vmmov 0   ;;  %v638_v11 = vld [vmem:[%s2186_s13 + $0x8] sm:$0xff]  ;;  %s2407_s19 = scalar_lea.vmem %s2364_s1, %s2169_s11  ;;  %v714_v27 = vlaneseq  ;;  %s2409_s23 = scalar_lea.vmem %s2368_s5, %s2169_s11 }
  0x58   : > { %1673 = vmatprep.subr.mxu0 %v1977_v9  ;;  %1681 = vmatprep.mubr.msk.f32.mxu0 %vm1978_vm2, %v1977_v9  ;;  %v637_v12 = vld [vmem:[%s2186_s13] sm:$0xff]  ;;  %s2408_s13 = scalar_lea.vmem %s2365_s2, %s2169_s11  ;;  %s1979_s14 = smov 120   ;;  %vm727_vm3 = vcmask 64512   ;;  %v721_v57 = vld [vmem:[%s2153_s16 + $0x8] sm:$0xff]  ;;  %v720_v58 = vld [vmem:[%s2153_s16] sm:$0xff]  ;;  %vm1054_vm5 = vcmask 130048  }
  0x59   : > { %1674 = vmatpush3.msra.mxu0 %v640_v8  ;;  %1689 = vmatprep.subr.mxu1 %v1977_v9  ;;  %v1617_v17 = vld [vmem:[%s2407_s19] ss:$0 sm:$0xff]  ;;  %s1980_s15 = smov 112   ;;  %s1981_s28 = smov 104   ;;  %v715_v28 = vshrl.u32 %v714_v27, 7  ;;  %v717_v29 = vand.u32 127, %v714_v27 }
  0x5a   : > { %1675 = vmatprep.subr.mxu0 %v1977_v9  ;;  %1691 = vmatprep.mubr.msk.f32.mxu1 %vm1978_vm2, %v1977_v9  ;;  %v1618_v19 = vld [vmem:[%s2408_s13] ss:$0 sm:$0xff]  ;;  %s1982_s26 = smov 80   ;;  %s1983_s30 = smov 96   ;;  %v723_v59 = vld [vmem:[%s2153_s16 + $0x18] sm:$0xff]  ;;  %vm1324_vm6 = vcmask 523264  }
  0x5b   : > { %1676 = vmatpush3.msra.mxu0 %v639_v10  ;;  %vm718_vm4 = vcmp.lt.s32.totalorder %v715_v28, %v717_v29  ;;  %v722_v60 = vld [vmem:[%s2153_s16 + $0x10] sm:$0xff] }
  0x5c   : > { %1677 = vmatprep.subr.mxu0 %v1977_v9  ;;  %v719_v30 = vsel %vm718_vm4, -1e+30, %v1977_v9  ;;  %v1628_v27 = vld [vmem:[%s2409_s23] ss:$0 sm:$0xff] }
  0x5d   : > { %v2218_v1 = vld [vmem:[%s2213_s24] sm:$0xff]  ;;  %1678 = vmatpush3.msra.mxu0 %v638_v11 }
  0x5e   : > { %v609_v2 = vsel %vm608_vm1, %v2218_v1, 0.0  ;;  %1679 = vmatprep.subr.mxu0 %v1977_v9  ;;  %v1629_v29 = vld [vmem:[%s582_s0] ss:$0 sm:$0xff] }
  0x5f   : > { %610 = vadd.xlane.f32.xlu0 %v609_v2  ;;  %1680 = vmatpush3.msra.mxu0 %v637_v12 }
  0x60   : > { %1684 = vmatprep.subr.mxu0 %v1977_v9 }
  0xe8   : > { %v611_v3 = vpop.xlane.xlu0 %610 }
  0xe9   : > { %v613_v4 = vmul.f32 0.03125, %v611_v3 }
  0xeb   : > { %v614_v5 = vsub.f32 %v2218_v1, %v613_v4 }
  0xed   : > { %v615_v6 = vmul.f32 %v614_v5, %v614_v5 }
  0xef   : > { %v616_v7 = vsel %vm608_vm1, %v615_v6, 0.0 }
  0xf0   : > { %617 = vadd.xlane.f32.xlu0 %v616_v7 }
 0x179   : > { %v618_v13 = vpop.xlane.xlu0 %617 }
 0x17a   : > { %v619_v14 = vmul.f32 0.03125, %v618_v13 }
 0x17c   : > { %v620_v15 = vadd.f32 1e-05, %v619_v14 }
 0x17e   : > { %1833 = vrsqrt.f32 %v620_v15  ;;  %v1234_v15 = vld [vmem:[%s2159_s12 + $0x18] sm:$0xff] }
 0x18b   : > { %v1834_v16 = vpop.eup %1833 }
 0x18c   : > { %v622_v18 = vmul.f32 %v1834_v16, %v614_v5  ;;  %v1232_v16 = vld [vmem:[%s2159_s12 + $0x8] sm:$0xff] }
 0x18e   : > { %v629_v20 = vmul.f32 %v1617_v17, %v622_v18  ;;  %v1231_v17 = vld [vmem:[%s2159_s12] sm:$0xff]  ;;  %v1323_v18 = vld [vmem:[%s2208_s3 + $0x38] sm:$0xff] }
 0x190   : > { %v636_v21 = vadd.f32 %v1618_v19, %v629_v20  ;;  %v1322_v19 = vld [vmem:[%s2208_s3 + $0x30] sm:$0xff]  ;;  %v1321_v20 = vld [vmem:[%s2208_s3 + $0x28] sm:$0xff] }
 0x192   : > { %1682 = vmatmul.mubr.msk.f32.vlgmr.msra.gmra.mxu0 %vm608_vm1, %v636_v21  ;;  %v1320_v21 = vld [vmem:[%s2208_s3 + $0x20] sm:$0xff] }
 0x193   : > { %1686 = vmatprep.mubr.msk.f32.mxu0 %vm1978_vm2, %v1977_v9 }
 0x252   : > { %v710_v22 = vpop.f32.mrf.mxu0 }
 0x253   : > { %889 = vrot.lane.b32.xlu0 %v710_v22, %s1979_s14  ;;  %725 = vrot.lane.b32.xlu1 %v710_v22, %s1980_s15 }
 0x254   : > { %v1683_v23 = vpop.f32.mrf.mxu0 }
 0x257   : > { %891 = vrot.lane.b32.xlu1 %v710_v22, %s1981_s28 }
 0x2c5   : > { %v726_v24 = vpop.permute.xlu1 %725  ;;  %v890_v26 = vpop.permute.xlu0 %889 }
 0x2c6   : > { %1685 = vmatpush3.xpose.msk.msra.mxu0 %vm727_vm3, %v726_v24 }
 0x2c7   : > { %1694 = vmatprep.subr.mxu0 %v1977_v9 }
 0x2c9   : > { %1687 = vmatmul.mubr.msk.f32.vlgmr.msra.gmra.mxu0 %vm727_vm3, %v710_v22  ;;  %v892_v25 = vpop.permute.xlu1 %891 }
 0x2ca   : > { %1695 = vmatpush3.xpose.msk.msra.mxu0 %vm727_vm3, %v892_v25  ;;  %1696 = vmatprep.mubr.msk.f32.mxu0 %vm1978_vm2, %v1977_v9 }
 0x2cb   : > { %1704 = vmatprep.subr.mxu0 %v1977_v9 }
 0x2cd   : > { %1697 = vmatmul.mubr.msk.f32.vlgmr.msra.gmra.mxu0 %vm727_vm3, %v890_v26 }
 0x2ce   : > { %1708 = vmatprep.mubr.msk.f32.mxu0 %vm1978_vm2, %v1977_v9  ;;  %1705 = vmatpush3.msra.mxu0 %v723_v59 }
 0x2cf   : > { %1706 = vmatprep.subr.mxu0 %v1977_v9 }
 0x2d0   : > { %1707 = vmatpush3.msra.mxu0 %v722_v60 }
 0x2d1   : > { %1718 = vmatprep.subr.mxu0 %v1977_v9 }
 0x389   : > { %v798_v31 = vpop.f32.mrf.mxu0 }
 0x38a   : > { %v799_v32 = vadd.f32 %v798_v31, %v719_v30 }
 0x38b   : > { %v1688_v33 = vpop.f32.mrf.mxu0 }
 0x38c   : > { %v802_v34 = vsel %vm727_vm3, %v799_v32, -inf  ;;  %v1317_v33 = vld [vmem:[%s2208_s3 + $0x8] sm:$0xff] }
 0x38d   : > { %803 = vmax.xlane.f32.xlu1 %v802_v34  ;;  %v963_v35 = vpop.f32.mrf.mxu0  ;;  %v1316_v34 = vld [vmem:[%s2208_s3] sm:$0xff] }
 0x38e   : > { %v964_v36 = vadd.f32 %v963_v35, %v719_v30  ;;  %v1630_v35 = vld [vmem:[%s585_s29] ss:$0 sm:$0xff] }
 0x38f   : > { %v1698_v37 = vpop.f32.mrf.mxu0 }
 0x390   : > { %v967_v38 = vsel %vm727_vm3, %v964_v36, -inf }
 0x391   : > { %968 = vmax.xlane.f32.xlu0 %v967_v38 }
 0x3a7   : > { %978 = vrot.lane.b32.xlu0 %v710_v22, %s1982_s26 }
 0x416   : > { %v804_v39 = vpop.xlane.xlu1 %803 }
 0x417   : > { %v805_v40 = vsub.f32 %v799_v32, %v804_v39  ;;  %v1318_v32 = vld [vmem:[%s2208_s3 + $0x10] sm:$0xff] }
 0x419   : > { %v806_v41 = vmul.f32 1.442695, %v805_v40 }
 0x41a   : > { %v969_v42 = vpop.xlane.xlu0 %968 }
 0x41b   : > { %1835 = vpow2.f32 %v806_v41  ;;  %v970_v43 = vsub.f32 %v964_v36, %v969_v42  ;;  %v1633_v41 = vld [vmem:[%s593_s18] ss:$0 sm:$0xff] }
 0x41d   : > { %v971_v44 = vmul.f32 1.442695, %v970_v43 }
 0x41e   : > { %v979_v54 = vpop.permute.xlu0 %978 }
 0x41f   : > { %1837 = vpow2.f32 %v971_v44 }
 0x428   : > { %v1836_v45 = vpop.eup %1835 }
 0x429   : > { %v808_v46 = vsel %vm727_vm3, %v1836_v45, 0.0 }
 0x42a   : > { %809 = vadd.xlane.f32.xlu1 %v808_v46 }
 0x42c   : > { %v1838_v47 = vpop.eup %1837 }
 0x42d   : > { %v973_v48 = vsel %vm727_vm3, %v1838_v47, 0.0 }
 0x42e   : > { %974 = vadd.xlane.f32.xlu1 %v973_v48 }
 0x43f   : > { %813 = vrot.lane.b32.xlu1 %v710_v22, %s1983_s30  ;;  %v1319_v22 = vld [vmem:[%s2208_s3 + $0x18] sm:$0xff] }
 0x4b3   : > { %v810_v49 = vpop.xlane.xlu1 %809 }
 0x4b4   : > { %1839 = vrcp.f32 %v810_v49 }
 0x4b7   : > { %v975_v50 = vpop.xlane.xlu1 %974 }
 0x4b8   : > { %1841 = vrcp.f32 %v975_v50 }
 0x4bb   : > { %v814_v51 = vpop.permute.xlu1 %813 }
 0x4bc   : > { %1690 = vmatpush3.msra.mxu1 %v814_v51 }
 0x4bd   : > { %1699 = vmatprep.subr.mxu1 %v1977_v9 }
 0x4c1   : > { %v1840_v52 = vpop.eup %1839 }
 0x4c2   : > { %v812_v53 = vmul.f32 %v1840_v52, %v1836_v45 }
 0x4c4   : > { %1692 = vmatmul.mubr.msk.f32.vlgmr.msra.gmra.mxu1 %vm727_vm3, %v812_v53 }
 0x4c5   : > { %v1842_v55 = vpop.eup %1841  ;;  %1700 = vmatpush3.msra.mxu1 %v979_v54  ;;  %1701 = vmatprep.mubr.msk.f32.mxu1 %vm1978_vm2, %v1977_v9 }
 0x4c6   : > { %v977_v56 = vmul.f32 %v1842_v55, %v1838_v47  ;;  %1711 = vmatprep.subr.mxu1 %v1977_v9 }
 0x4c8   : > { %1702 = vmatmul.mubr.msk.f32.vlgmr.msra.gmra.mxu1 %vm727_vm3, %v977_v56 }
 0x4c9   : > { %1712 = vmatpush3.msra.mxu1 %v721_v57  ;;  %1715 = vmatprep.mubr.msk.f32.mxu1 %vm1978_vm2, %v1977_v9 }
 0x4ca   : > { %1713 = vmatprep.subr.mxu1 %v1977_v9 }
 0x4cb   : > { %1714 = vmatpush3.msra.mxu1 %v720_v58 }
 0x4cc   : > { %1729 = vmatprep.subr.mxu1 %v1977_v9 }
 0x584   : > { %v885_v61 = vpop.f32.mrf.mxu1 }
 0x585   : > { %1716 = vmatmul.mubr.msk.f32.vlgmr.msra.gmra.mxu1 %vm1054_vm5, %v885_v61 }
 0x586   : > { %v1693_v62 = vpop.f32.mrf.mxu1  ;;  %1745 = vmatprep.mubr.msk.f32.mxu1 %vm1978_vm2, %v1977_v9  ;;  %1730 = vmatpush3.msra.mxu1 %v1323_v18 }
 0x587   : > { %1731 = vmatprep.subr.mxu1 %v1977_v9 }
 0x588   : > { %v1050_v63 = vpop.f32.mrf.mxu1  ;;  %1732 = vmatpush3.msra.mxu1 %v1322_v19 }
 0x589   : > { %1709 = vmatmul.mubr.msk.f32.vlgmr.msra.gmra.mxu0 %vm1054_vm5, %v1050_v63  ;;  %1733 = vmatprep.subr.mxu1 %v1977_v9 }
 0x58a   : > { %v1703_v0 = vpop.f32.mrf.mxu1  ;;  %1726 = vmatprep.mubr.msk.f32.mxu0 %vm1978_vm2, %v1977_v9  ;;  %1719 = vmatpush3.msra.mxu0 %v1234_v15 }
 0x58b   : > { %1720 = vmatprep.subr.mxu0 %v1977_v9  ;;  %1734 = vmatpush3.msra.mxu1 %v1321_v20 }
 0x58c   : > { %1735 = vmatprep.subr.mxu1 %v1977_v9 }
 0x58d   : > { %1736 = vmatpush3.msra.mxu1 %v1320_v21 }
 0x58e   : > { %1737 = vmatprep.subr.mxu1 %v1977_v9 }
 0x58f   : > { %1738 = vmatpush3.msra.mxu1 %v1319_v22 }
 0x590   : > { %1739 = vmatprep.subr.mxu1 %v1977_v9 }
 0x591   : > { %1740 = vmatpush3.msra.mxu1 %v1318_v32 }
 0x592   : > { %1741 = vmatprep.subr.mxu1 %v1977_v9 }
 0x593   : > { %1742 = vmatpush3.msra.mxu1 %v1317_v33 }
 0x594   : > { %1743 = vmatprep.subr.mxu1 %v1977_v9 }
 0x595   : > { %1744 = vmatpush3.msra.mxu1 %v1316_v34 }
 0x645   : > { %v1197_v2 = vpop.f32.mrf.mxu1 }
 0x647   : > { %v1717_v3 = vpop.f32.mrf.mxu1 }
 0x649   : > { %v1124_v4 = vpop.f32.mrf.mxu0 }
 0x64a   : > { %v1198_v5 = vadd.f32 %v1197_v2, %v1124_v4 }
 0x64b   : > { %v1710_v6 = vpop.f32.mrf.mxu0 }
 0x64c   : > { %v2287_v7 = vadd.f32 %v1198_v5, %v2218_v1  ;;  %v1233_v1 = vld [vmem:[%s2159_s12 + $0x10] sm:$0xff] }
 0x64d   : > { %1721 = vmatpush3.msra.mxu0 %v1233_v1 }
 0x64e   : > { %v1204_v8 = vsel %vm608_vm1, %v2287_v7, 0.0  ;;  %1722 = vmatprep.subr.mxu0 %v1977_v9 }
 0x64f   : > { %1205 = vadd.xlane.f32.xlu1 %v1204_v8  ;;  %1723 = vmatpush3.msra.mxu0 %v1232_v16 }
 0x650   : > { %1724 = vmatprep.subr.mxu0 %v1977_v9 }
 0x651   : > { %1725 = vmatpush3.msra.mxu0 %v1231_v17 }
 0x6d8   : > { %v1206_v10 = vpop.xlane.xlu1 %1205 }
 0x6d9   : > { %v1207_v11 = vmul.f32 0.03125, %v1206_v10 }
 0x6db   : > { %v1208_v12 = vsub.f32 %v2287_v7, %v1207_v11 }
 0x6dd   : > { %v1209_v13 = vmul.f32 %v1208_v12, %v1208_v12 }
 0x6df   : > { %v1210_v14 = vsel %vm608_vm1, %v1209_v13, 0.0 }
 0x6e0   : > { %1211 = vadd.xlane.f32.xlu0 %v1210_v14 }
 0x769   : > { %v1212_v23 = vpop.xlane.xlu0 %1211 }
 0x76a   : > { %v1213_v24 = vmul.f32 0.03125, %v1212_v23 }
 0x76c   : > { %v1214_v25 = vadd.f32 1e-05, %v1213_v24 }
 0x76e   : > { %1843 = vrsqrt.f32 %v1214_v25 }
 0x77b   : > { %v1844_v26 = vpop.eup %1843 }
 0x77c   : > { %v1216_v28 = vmul.f32 %v1844_v26, %v1208_v12 }
 0x77e   : > { %v1223_v30 = vmul.f32 %v1628_v27, %v1216_v28 }
 0x780   : > { %v1230_v31 = vadd.f32 %v1629_v29, %v1223_v30 }
 0x782   : > { %1727 = vmatmul.mubr.msk.f32.vlgmr.msra.gmra.mxu0 %vm608_vm1, %v1230_v31 }
 0x842   : > { %v1311_v36 = vpop.f32.mrf.mxu0 }
 0x843   : > { %v1312_v37 = vadd.f32 %v1630_v35, %v1311_v36 }
 0x844   : > { %v1728_v38 = vpop.f32.mrf.mxu0 }
 0x845   : > { %v1315_v39 = vmax.f32 %v1312_v37, 0.0 }
 0x847   : > { %1746 = vmatmul.mubr.msk.f32.vlgmr.msra.gmra.mxu1 %vm1324_vm6, %v1315_v39 }
 0x907   : > { %v1394_v40 = vpop.f32.mrf.mxu1 }
 0x908   : > { %v1398_v9 = vadd.f32 %v1394_v40, %v2287_v7 }
 0x909   : > { %v1747_v42 = vpop.f32.mrf.mxu1 }
 0x90a   : > { %v1406_v43 = vadd.f32 %v1633_v41, %v1398_v9 }
 0x90c   : > { %1407 = vst.msk [vmem:[%s2213_s24] sm:$0xff] %vm608_vm1, %v1406_v43 }
 0x90d PF: > { %s2410_s3 = sld [smem:[#allocation12_spill]] }
 0x90e   : > { %s2411_s17 = sld [smem:[#allocation8_spill]] }
 0x90f   : > { %s2412_s18 = sld [smem:[#allocation9_spill]] }
 0x910   : > { %s2413_s19 = sld [smem:[#allocation15_spill]] }
 0x911   : > { %s2414_s20 = sld [smem:[#allocation10_spill]] }
 0x912   : > { %s2415_s21 = sld [smem:[#allocation11_spill]] }
 0x913   : > { %s27_s24 = sadd.s32 1, %s2410_s3   ;;  %s2416_s22 = sld [smem:[#allocation13_spill]] }
 0x914   : > { %p24_p4 = scmp.ge.s32.totalorder %s27_s24, 6   ;;  %s2417_s23 = sld [smem:[#allocation14_spill]] }
 0x916   :  { %26 = sbr.rel (!%p24_p4) target bundleno = 14 (0xe), region = 148 }
 0x91b   :  { %1427 = vsyncpa [#allocation3], 1 }
 0x91c   :  { %1429 = vsyncpa [#allocation3 + $0x1], 1 }
 0x91d   :  { %1430 = vsyncpa [#allocation5], 1 }
 0x91e   :  { %1432 = vsyncpa [#allocation5 + $0x1], 1 }

</bundles_post_ra>
